<compile_context>
chip_gen: v7x
topology: tpu7x:2x2x1
jax: 0.10.0
libtpu: 0.0.40
codegen_flags: <defaults>
</compile_context>

<pallas_src>
import functools

import jax
import jax.numpy as jnp
from jax import lax
from jax.experimental import pallas as pl
from jax.experimental.pallas import tpu as pltpu

D = 512          # hidden dim fixed by nn.Linear(512, 512, bias=False)
NUM_PROJ = 3     # q, k, v weight tiles


def _attention_kernel(x_ref, w_ref, o_ref, qkv_ref, *, batch, seq):
    """One grid step per projection-weight tile (t=0: Wq, t=1: Wk, t=2: Wv).

    x_ref:   (B*S, D)     bf16, same block every step (fetched once)
    w_ref:   (D, D)       bf16, weight tile t of the fused (3D, D) weight
    o_ref:   (B*S, D)     f32, written on the last step only
    qkv_ref: (3, B*S, D)  f32 VMEM scratch holding q/k/v across steps
    """
    t = pl.program_id(0)

    # Projection for this tile: contract x's feature dim with the weight's
    # input dim (i.e. x @ W_t.T) -- bf16 operands, f32 accumulation on the MXU.
    qkv_ref[t] = lax.dot_general(
        x_ref[...], w_ref[...],
        dimension_numbers=(((1,), (1,)), ((), ())),
        preferred_element_type=jnp.float32)

    # After the last weight tile, q/k/v are all resident in VMEM scratch:
    # run the (tiny) attention math and emit the output once.
    @pl.when(t == pl.num_programs(0) - 1)
    def _():
        q = qkv_ref[0].astype(jnp.bfloat16)
        k = qkv_ref[1].astype(jnp.bfloat16)
        v = qkv_ref[2].astype(jnp.bfloat16)
        for b in range(batch):                       # static unroll (B is tiny)
            lo = b * seq                             # 8-row aligned static slices
            q_b = q[lo:lo + seq]
            k_b = k[lo:lo + seq]
            v_b = v[lo:lo + seq]
            # scores: q @ k.T as a feature-dim contraction (no transposed k)
            s = lax.dot_general(
                q_b, k_b,
                dimension_numbers=(((1,), (1,)), ((), ())),
                preferred_element_type=jnp.float32) * 5.0
            # numerically-stable softmax along the last axis (exact division)
            s = s - jnp.max(s, axis=-1, keepdims=True)
            e = jnp.exp(s)
            p = e / jnp.sum(e, axis=-1, keepdims=True)
            # Dropout(0.1) in eval mode == identity.
            o_b = jnp.dot(p.astype(jnp.bfloat16), v_b,
                          preferred_element_type=jnp.float32)
            o_ref[lo:lo + seq, :] = o_b


def pack_qkv_weights(wq, wk, wv):
    """One-time prepack (call at parameter init, NOT per forward):
    row-wise concat of the three Linear weights in their native (out, in)
    layout (no transpose needed -- the kernel contracts over the input dim)
    and a bf16 cast so the dominant HBM weight read is halved."""
    return jnp.concatenate([wq, wk, wv], axis=0).astype(jnp.bfloat16)   # (3D, D)


@jax.jit
def model_forward(inputs, w_qkv):
    """inputs: (B, S, D) float32; w_qkv: prepacked (3D, D) bf16 fused weight.

    Returns (B, D, S) float32, matching Model.forward (trailing transpose).
    """
    B, S, d = inputs.shape
    assert d == D, d
    assert (B * S) % 8 == 0, "B*S must be a multiple of 8 (sublane rule)"

    x = inputs.reshape(B * S, D).astype(jnp.bfloat16)
    kernel = functools.partial(_attention_kernel, batch=B, seq=S)

    out = pl.pallas_call(
        kernel,
        out_shape=jax.ShapeDtypeStruct((B * S, D), jnp.float32),
        grid_spec=pltpu.PrefetchScalarGridSpec(
            num_scalar_prefetch=0,
            grid=(NUM_PROJ,),
            in_specs=[
                pl.BlockSpec((B * S, D), lambda t: (0, 0)),   # x, fetched once
                pl.BlockSpec((D, D), lambda t: (t, 0)),       # weight tile t
            ],
            out_specs=pl.BlockSpec((B * S, D), lambda t: (0, 0)),
            scratch_shapes=[pltpu.VMEM((NUM_PROJ, B * S, D), jnp.float32)],
        ),
        compiler_params=pltpu.CompilerParams(
            dimension_semantics=("arbitrary",)),
    )(x, w_qkv)

    # final .transpose(-2, -1): (B, S, D) -> (B, D, S) as wrapper glue
    # (at S=8 an in-kernel transposed write would be lane-sparse anyway).
    return jnp.transpose(out.reshape(B, S, D), (0, 2, 1))


def reference_forward(inputs, wq, wk, wv):
    """Pure-JAX reference with the SAME operand precision as the kernel
    (bf16 matmul operands, f32 accumulation)."""
    bf16, f32 = jnp.bfloat16, jnp.float32
    x = inputs.astype(bf16)
    q = jnp.einsum("bsd,od->bso", x, wq.astype(bf16), preferred_element_type=f32)
    k = jnp.einsum("bsd,od->bso", x, wk.astype(bf16), preferred_element_type=f32)
    v = jnp.einsum("bsd,od->bso", x, wv.astype(bf16), preferred_element_type=f32)
    s = jnp.einsum("bqd,bkd->bqk", q.astype(bf16), k.astype(bf16),
                   preferred_element_type=f32) * 5.0
    p = jax.nn.softmax(s, axis=-1)
    o = jnp.einsum("bqk,bkd->bqd", p.astype(bf16), v.astype(bf16),
                   preferred_element_type=f32)
    return jnp.transpose(o, (0, 2, 1))


if __name__ == "__main__":
    key = jax.random.PRNGKey(0)
    k0, k1, k2, k3 = jax.random.split(key, 4)

    B, S = 2, 8
    inputs = 0.5 * jax.random.normal(k0, (B, S, D), dtype=jnp.float32)

    # deterministic "Linear(512, 512, bias=False)" weights, shape (out, in)
    scale = 1.0 / jnp.sqrt(jnp.float32(D))
    wq = jax.random.uniform(k1, (D, D), jnp.float32, -scale, scale)
    wk = jax.random.uniform(k2, (D, D), jnp.float32, -scale, scale)
    wv = jax.random.uniform(k3, (D, D), jnp.float32, -scale, scale)

    # One-time weight prepack (outside the per-call forward).
    w_qkv = pack_qkv_weights(wq, wk, wv)

    out = jax.block_until_ready(model_forward(inputs, w_qkv))
    ref = reference_forward(inputs, wq, wk, wv)

    assert out.shape == (B, D, S), out.shape
    assert jnp.allclose(out, ref, atol=2e-2, rtol=2e-2), (
        "mismatch vs reference: max abs err = "
        f"{float(jnp.max(jnp.abs(out - ref)))}")

    print("KERNEL_OK")
</pallas_src>

<mosaic_0001>
module attributes {stable_mosaic.version = 11 : i64} {
  func.func @_attention_kernel(%arg0: i32, %arg1: memref<16x512xbf16, #tpu.memory_space<vmem>>, %arg2: memref<512x512xbf16, #tpu.memory_space<vmem>>, %arg3: memref<16x512xf32, #tpu.memory_space<vmem>>, %arg4: memref<3x16x512xf32, #tpu.memory_space<vmem>>) attributes {dimension_semantics = [#tpu.dimension_semantics<arbitrary>], iteration_bounds = array<i64: 3>, scalar_prefetch = 0 : i64, scratch_operands = 1 : i64, tpu.core_type = #tpu.core_type<tc>, window_params = [{pipeline_mode = #tpu.pipeline_mode<synchronous>, transform_indices = @transform_0, window_bounds = array<i64: 16, 512>}, {transform_indices = @transform_1, window_bounds = array<i64: 512, 512>}, {pipeline_mode = #tpu.pipeline_mode<synchronous>, transform_indices = @transform_2, window_bounds = array<i64: 16, 512>}]} {
    %c0 = arith.constant 0 : index
    %c0_0 = arith.constant 0 : index
    %0 = vector.load %arg1[%c0, %c0_0] : memref<16x512xbf16, #tpu.memory_space<vmem>>, vector<16x512xbf16>
    %c0_1 = arith.constant 0 : index
    %c0_2 = arith.constant 0 : index
    %1 = vector.load %arg2[%c0_1, %c0_2] : memref<512x512xbf16, #tpu.memory_space<vmem>>, vector<512x512xbf16>
    %cst = arith.constant dense<0.000000e+00> : vector<16x512xf32>
    %2 = tpu.matmul %0, %1, %cst {dimension_numbers = #tpu.dot_dimension_numbers<[1], [1], [0], [0], [0, 0, 1, 0], [], []>} : vector<16x512xbf16>, vector<512x512xbf16>, vector<16x512xf32> -> vector<16x512xf32>
    %3 = arith.index_cast %arg0 : i32 to index
    %c0_3 = arith.constant 0 : index
    %c0_4 = arith.constant 0 : index
    %4 = vector.load %arg4[%3, %c0_3, %c0_4] : memref<3x16x512xf32, #tpu.memory_space<vmem>>, vector<1x16x512xf32>
    %5 = vector.shape_cast %4 : vector<1x16x512xf32> to vector<16x512xf32>
    %6 = vector.shape_cast %2 : vector<16x512xf32> to vector<1x16x512xf32>
    tpu.vector_store %arg4[%3, %c0_3, %c0_4], %6 {strides = array<i32>} : memref<3x16x512xf32, #tpu.memory_space<vmem>>, vector<1x16x512xf32>,
    %c2_i32 = arith.constant 2 : i32
    %7 = arith.cmpi eq, %arg0, %c2_i32 : i32
    %8 = arith.extui %7 : i1 to i32
    %c0_i32 = arith.constant 0 : i32
    %9 = arith.cmpi ne, %8, %c0_i32 : i32
    scf.if %9 {
      %c0_5 = arith.constant 0 : index
      %c0_6 = arith.constant 0 : index
      %c0_7 = arith.constant 0 : index
      %10 = vector.load %arg4[%c0_5, %c0_6, %c0_7] : memref<3x16x512xf32, #tpu.memory_space<vmem>>, vector<1x16x512xf32>
      %11 = vector.shape_cast %10 : vector<1x16x512xf32> to vector<16x512xf32>
      %12 = arith.truncf %11 : vector<16x512xf32> to vector<16x512xbf16>
      %c1 = arith.constant 1 : index
      %c0_8 = arith.constant 0 : index
      %c0_9 = arith.constant 0 : index
      %13 = vector.load %arg4[%c1, %c0_8, %c0_9] : memref<3x16x512xf32, #tpu.memory_space<vmem>>, vector<1x16x512xf32>
      %14 = vector.shape_cast %13 : vector<1x16x512xf32> to vector<16x512xf32>
      %15 = arith.truncf %14 : vector<16x512xf32> to vector<16x512xbf16>
      %c2 = arith.constant 2 : index
      %c0_10 = arith.constant 0 : index
      %c0_11 = arith.constant 0 : index
      %16 = vector.load %arg4[%c2, %c0_10, %c0_11] : memref<3x16x512xf32, #tpu.memory_space<vmem>>, vector<1x16x512xf32>
      %17 = vector.shape_cast %16 : vector<1x16x512xf32> to vector<16x512xf32>
      %18 = arith.truncf %17 : vector<16x512xf32> to vector<16x512xbf16>
      %19 = vector.extract_strided_slice %12 {offsets = [0, 0], sizes = [8, 512], strides = [1, 1]} : vector<16x512xbf16> to vector<8x512xbf16>
      %20 = vector.extract_strided_slice %15 {offsets = [0, 0], sizes = [8, 512], strides = [1, 1]} : vector<16x512xbf16> to vector<8x512xbf16>
      %21 = vector.extract_strided_slice %18 {offsets = [0, 0], sizes = [8, 512], strides = [1, 1]} : vector<16x512xbf16> to vector<8x512xbf16>
      %cst_12 = arith.constant dense<0.000000e+00> : vector<8x8xf32>
      %22 = tpu.matmul %19, %20, %cst_12 {dimension_numbers = #tpu.dot_dimension_numbers<[1], [1], [0], [0], [0, 0, 1, 0], [], []>} : vector<8x512xbf16>, vector<8x512xbf16>, vector<8x8xf32> -> vector<8x8xf32>
      %cst_13 = arith.constant 5.000000e+00 : f32
      %23 = vector.broadcast %cst_13 : f32 to vector<8x8xf32>
      %24 = arith.mulf %22, %23 : vector<8x8xf32>
      %cst_14 = arith.constant dense<0xFF800000> : vector<8xf32>
      %25 = vector.multi_reduction <maximumf>, %24, %cst_14 [1] : vector<8x8xf32> to vector<8xf32>
      %26 = vector.shape_cast %25 : vector<8xf32> to vector<8x1xf32>
      %27 = vector.broadcast %26 : vector<8x1xf32> to vector<8x8xf32>
      %28 = arith.subf %24, %27 : vector<8x8xf32>
      %29 = math.exp %28 : vector<8x8xf32>
      %cst_15 = arith.constant dense<0.000000e+00> : vector<8xf32>
      %30 = vector.multi_reduction <add>, %29, %cst_15 [1] : vector<8x8xf32> to vector<8xf32>
      %31 = vector.shape_cast %30 : vector<8xf32> to vector<8x1xf32>
      %32 = vector.broadcast %31 : vector<8x1xf32> to vector<8x8xf32>
      %33 = arith.divf %29, %32 : vector<8x8xf32>
      %34 = arith.truncf %33 : vector<8x8xf32> to vector<8x8xbf16>
      %cst_16 = arith.constant dense<0.000000e+00> : vector<8x512xf32>
      %35 = tpu.matmul %34, %21, %cst_16 {dimension_numbers = #tpu.dot_dimension_numbers<[1], [0], [0], [1], [0, 0, 1, 1], [], []>} : vector<8x8xbf16>, vector<8x512xbf16>, vector<8x512xf32> -> vector<8x512xf32>
      %c0_17 = arith.constant 0 : index
      %c0_18 = arith.constant 0 : index
      %36 = vector.load %arg3[%c0_17, %c0_18] : memref<16x512xf32, #tpu.memory_space<vmem>>, vector<8x512xf32>
      tpu.vector_store %arg3[%c0_17, %c0_18], %35 {strides = array<i32>} : memref<16x512xf32, #tpu.memory_space<vmem>>, vector<8x512xf32>,
      %37 = vector.extract_strided_slice %12 {offsets = [8, 0], sizes = [8, 512], strides = [1, 1]} : vector<16x512xbf16> to vector<8x512xbf16>
      %38 = vector.extract_strided_slice %15 {offsets = [8, 0], sizes = [8, 512], strides = [1, 1]} : vector<16x512xbf16> to vector<8x512xbf16>
      %39 = vector.extract_strided_slice %18 {offsets = [8, 0], sizes = [8, 512], strides = [1, 1]} : vector<16x512xbf16> to vector<8x512xbf16>
      %cst_19 = arith.constant dense<0.000000e+00> : vector<8x8xf32>
      %40 = tpu.matmul %37, %38, %cst_19 {dimension_numbers = #tpu.dot_dimension_numbers<[1], [1], [0], [0], [0, 0, 1, 0], [], []>} : vector<8x512xbf16>, vector<8x512xbf16>, vector<8x8xf32> -> vector<8x8xf32>
      %cst_20 = arith.constant 5.000000e+00 : f32
      %41 = vector.broadcast %cst_20 : f32 to vector<8x8xf32>
      %42 = arith.mulf %40, %41 : vector<8x8xf32>
      %cst_21 = arith.constant dense<0xFF800000> : vector<8xf32>
      %43 = vector.multi_reduction <maximumf>, %42, %cst_21 [1] : vector<8x8xf32> to vector<8xf32>
      %44 = vector.shape_cast %43 : vector<8xf32> to vector<8x1xf32>
      %45 = vector.broadcast %44 : vector<8x1xf32> to vector<8x8xf32>
      %46 = arith.subf %42, %45 : vector<8x8xf32>
      %47 = math.exp %46 : vector<8x8xf32>
      %cst_22 = arith.constant dense<0.000000e+00> : vector<8xf32>
      %48 = vector.multi_reduction <add>, %47, %cst_22 [1] : vector<8x8xf32> to vector<8xf32>
      %49 = vector.shape_cast %48 : vector<8xf32> to vector<8x1xf32>
      %50 = vector.broadcast %49 : vector<8x1xf32> to vector<8x8xf32>
      %51 = arith.divf %47, %50 : vector<8x8xf32>
      %52 = arith.truncf %51 : vector<8x8xf32> to vector<8x8xbf16>
      %cst_23 = arith.constant dense<0.000000e+00> : vector<8x512xf32>
      %53 = tpu.matmul %52, %39, %cst_23 {dimension_numbers = #tpu.dot_dimension_numbers<[1], [0], [0], [1], [0, 0, 1, 1], [], []>} : vector<8x8xbf16>, vector<8x512xbf16>, vector<8x512xf32> -> vector<8x512xf32>
      %c8 = arith.constant 8 : index
      %c0_24 = arith.constant 0 : index
      %54 = vector.load %arg3[%c8, %c0_24] : memref<16x512xf32, #tpu.memory_space<vmem>>, vector<8x512xf32>
      tpu.vector_store %arg3[%c8, %c0_24], %53 {strides = array<i32>} : memref<16x512xf32, #tpu.memory_space<vmem>>, vector<8x512xf32>,
    } else {
    }
    return
  }
  func.func @transform_0(%arg0: i32) -> (i32, i32) {
    %c0_i32 = arith.constant 0 : i32
    %c0_i32_0 = arith.constant 0 : i32
    %c0_i32_1 = arith.constant 0 : i32
    return %c0_i32, %c0_i32_0 : i32, i32
  }
  func.func @transform_1(%arg0: i32) -> (i32, i32) {
    %c0_i32 = arith.constant 0 : i32
    %c0_i32_0 = arith.constant 0 : i32
    return %arg0, %c0_i32 : i32, i32
  }
  func.func @transform_2(%arg0: i32) -> (i32, i32) {
    %c0_i32 = arith.constant 0 : i32
    %c0_i32_0 = arith.constant 0 : i32
    %c0_i32_1 = arith.constant 0 : i32
    return %c0_i32, %c0_i32_0 : i32, i32
  }
}

</mosaic_0001>

<bundles_post_ra>
// kernel: model_forward.1
= control target key start
LH: loop header
LB: loop body
LE: loop exit
PB: predicated region body
PF: predicated region fallthrough
CT: control target
= control target key end

     0   :  { %7 = vsyncpa [#allocation4], 0  ;;  %s2537_s0 = inlined_call_operand.vmem [shape: bf16[16,512], index: 0, kind: input, shape index: {}]   ;;  %s2538_s1 = inlined_call_operand.hbm [shape: bf16[1536,512], index: 1, kind: input, shape index: {}]   ;;  %s2539_s2 = inlined_call_operand.hbm [shape: f32[16,512], index: 2, kind: output, shape index: {}]  }
   0x1   :  { %9 = vsyncpa [#allocation4 + $0x1], 0 }
   0x2   :  { %10 = vsyncpa [#allocation5], 0  ;;  %s2203_s9 = smov 0   ;;  %s2205_s10 = smov 0  }
   0x3   :  { %s2207_s11 = smov 0   ;;  %s2209_s12 = smov 0  }
   0x4 LB: > { %s2222_s13 = sadd.s32 4294967295, %s2179_s12   ;;  %s2225_s14 = sadd.s32 1, %s2179_s12   ;;  %s2179_s12 = sphi %s2209_s12, %s2546_s12   ;;  %s2175_s11 = sphi %s2207_s11, %s2545_s11   ;;  %s2171_s10 = sphi %s2205_s10, %s2544_s10   ;;  %s2167_s9 = sphi %s2203_s9, %s2543_s9  }
   0x5   : > { %s41_s15 = ssub.s32 %s2179_s12, %s2225_s14  ;;  %s44_s16 = sadd.s32 1, %s2175_s11 }
   0x6   : > { %p42_p0 = scmp.eq.s32.totalorder %s41_s15, 0  ;;  %p51_p1 = scmp.ne.s32.totalorder %s2175_s11, %s2171_s10 }
   0x7   : > { %p52_p2 = scmp.eq.s32.totalorder %s2179_s12, 0  ;;  %p57_p3 = scmp.ne.s32.totalorder %s2171_s10, %s2167_s9 }
   0x8   : > { %s2235_s17 = scalar_select %p42_p0, %s2175_s11, %s44_s16  }
   0x9   : > { %p53_p4 = por %p52_p2, %p51_p1  ;;  %p58_p5 = scmp.eq.s32.totalorder %s2222_s13, 0 }
   0xa   : > { %p1838_p6 = scmp.lt.s32.totalorder %s2179_s12, 3  ;;  %s105_s19 = sand.u32 1, %s2175_s11  }
   0xb   : > { %p2239_p7 = por %p58_p5, %p57_p3  ;;  %s1656_s20 = sshll.u32 %s105_s19, 10 }
   0xc   : > { %s1810_s21 = sshll.u32 %s2179_s12, 14  ;;  %s109_s25 = scalar_lea.vmem [#allocation3], %s1656_s20 }
   0xd   : > { %s2248_s24 = scalar_lea.hbm %s2538_s1, %s1810_s21  ;;  %s117_s26 = sshll.u32 %s109_s25, 4  ;;  %s2250_s26 = int_to_ptr.vmem [resolvable:$true] %s117_s26 }
   0xe   : > { %p2252_p8 = pnand %p1838_p6, %p53_p4  ;;  %s2257_s28 = scalar_lea.sflag [#allocation4], %s105_s19 }
   0xf   : > { %s2085_s29 = scalar_lea.hbm %s2248_s24, 16384  ;;  %s2090_s4 = scalar_lea.hbm %s2538_s1, 49152 }
  0x10   : > { %p2086_p10 = scmp.ne.s32.totalorder %s2248_s24, %s2085_s29  ;;  %p2087_p11 = pneg %p2252_p8 }
  0x11   : > { %p2091_p0 = scmp.lt.u32.totalorder %s2248_s24, %s2538_s1  ;;  %p2092_p1 = scmp.lt.u32.totalorder %s2090_s4, %s2085_s29 }
  0x12   : > { %p2088_p12 = pnand %p2087_p11, %p2086_p10  ;;  %p2094_p3 = scmp.lt.u32.totalorder %s2085_s29, %s2248_s24 }
  0x13   : > { %p2093_p2 = por %p2092_p1, %p2091_p0 }
  0x14   : > { %p2089_p13 = pneg %p2088_p12 }
  0x15   : > { %p2095_p4 = por %p2094_p3, %p2093_p2 }
  0x17   : > { %p2096_p5 = pnand %p2095_p4, %p2089_p13 }
  0x19   : > { %2099 = shalt.err (!%p2096_p5)
}
  0x1a   : > { %s2100_s7 = scalar_lea.vmem %s2250_s26, 16384  ;;  %s2181_s8 = smov [#allocation3]  }
  0x1b   : > { %p2101_p6 = scmp.ne.s32.totalorder %s2250_s26, %s2100_s7  ;;  %s2105_s9 = sshll.u32 %s2181_s8, 4  ;;  %s2106_s9 = int_to_ptr.vmem [resolvable:$false] %s2105_s9 }
  0x1c   : > { %s2107_s15 = scalar_lea.vmem %s2106_s9, 32768  ;;  %p2108_p9 = scmp.lt.s32.totalorder %s2250_s26, %s2106_s9 }
  0x1d   : > { %p2103_p10 = pnand %p2101_p6, %p2087_p11  ;;  %p2109_p0 = scmp.lt.s32.totalorder %s2107_s15, %s2100_s7 }
  0x1f   : > { %p2104_p12 = pneg %p2103_p10  ;;  %p2110_p1 = por %p2109_p0, %p2108_p9 }
  0x21   : > { %p2111_p2 = pnand %p2110_p1, %p2104_p12 }
  0x23   : > { %2114 = shalt.err (!%p2111_p2)
}
  0x24   : > { %s2182_s16 = smov 256   ;;  %s2183_s19 = smov 16  }
  0x25   : > { %1837 = dma.hbm_to_vmem [thread:$0]  (!%p2252_p8), %s2248_s24, 16384, %s2250_s26, %s2257_s28, %s2182_s16, %s2182_s16, %s2183_s19  }
  0x26   : > { %p125_p11 = scmp.lt.s32.totalorder %s2179_s12, 4  ;;  %p2542_p13 = scmp.ge.s32.totalorder %s2179_s12, 1 }
  0x28   : > { %p126_p3 = pnand %p2542_p13, %p125_p11 }
  0x29   : > { %s131_s20 = sand.u32 (!%p126_p3), 1, %s2171_s10  }
  0x2a   : > { %129 = sbr.rel (%p126_p3) target bundleno = 1892 (0x764), region = 28  ;;  %s1661_s21 = sshll.u32 (!%p126_p3), %s131_s20, 10 }
  0x2b   : > { %s132_s22 = scalar_lea.sflag (!%p126_p3), [#allocation4], %s131_s20  ;;  %s2289_s23 = scalar_lea.vmem (!%p126_p3), [#allocation3], %s1661_s21 }
  0x31   : > { %2158 = dma.done.wait (%p2239_p7), %s132_s22, 16384  }
  0x32   : > { %2160 = vsyncadd (%p2239_p7), %s132_s22, 4294950912  ;;  %v1879_v0 = vld [vmem:[%s2289_s23 + $0x4] ss:$16 sps:$4 sm:$0xff]   ;;  %v1883_v2 = vld [vmem:[%s2289_s23] ss:$16 sps:$4 sm:$0xff]   ;;  %s1811_s30 = sshll.u32 %s2222_s13, 6 }
  0x33   : > { %v1881_v1 = vld [vmem:[%s2289_s23 + $0x204] ss:$16 sps:$4 sm:$0xff]   ;;  %945 = vmatprep.subr.bf16.mxu0 %v1879_v0  ;;  %v1884_v3 = vld [vmem:[%s2289_s23 + $0x200] ss:$16 sps:$4 sm:$0xff]   ;;  %s1119_s3 = scalar_lea.vmem [#allocation2], %s1811_s30  ;;  %p1796_p7 = scmp.ne.s32.totalorder %s2222_s13, 2 }
  0x34   : > { %1031 = vmatprep.subr.bf16.mxu1 %v1881_v1  ;;  %v1885_v4 = vld [vmem:[%s2289_s23 + $0x24] ss:$16 sps:$4 sm:$0xff]   ;;  %946 = vmatpush1.bf16.xpose.msra.mxu0 %v1883_v2  ;;  %v1889_v6 = vld [vmem:[%s2289_s23 + $0x20] ss:$16 sps:$4 sm:$0xff]   ;;  %v1980_v1 = vld [vmem:[%s2289_s23 + $0xc] ss:$16 sps:$4 sm:$0xff]  }
  0x35   : > { %1032 = vmatpush1.bf16.xpose.msra.mxu1 %v1884_v3  ;;  %v1887_v5 = vld [vmem:[%s2289_s23 + $0x224] ss:$16 sps:$4 sm:$0xff]   ;;  %947 = vmatprep.subr.bf16.mxu0 %v1885_v4  ;;  %v1890_v7 = vld [vmem:[%s2289_s23 + $0x220] ss:$16 sps:$4 sm:$0xff]   ;;  %v1983_v2 = vld [vmem:[%s2289_s23 + $0x20c] ss:$16 sps:$4 sm:$0xff]  }
  0x36   : > { %1033 = vmatprep.subr.bf16.mxu1 %v1887_v5  ;;  %v1891_v8 = vld [vmem:[%s2289_s23 + $0x44] ss:$16 sps:$4 sm:$0xff]   ;;  %v1895_v10 = vld [vmem:[%s2289_s23 + $0x40] ss:$16 sps:$4 sm:$0xff]   ;;  %v1978_v4 = vld [vmem:[%s2289_s23 + $0x8] ss:$16 sps:$4 sm:$0xff]  }
  0x37   : > { %v1893_v9 = vld [vmem:[%s2289_s23 + $0x244] ss:$16 sps:$4 sm:$0xff]   ;;  %v1896_v11 = vld [vmem:[%s2289_s23 + $0x240] ss:$16 sps:$4 sm:$0xff]   ;;  %v1981_v5 = vld [vmem:[%s2289_s23 + $0x208] ss:$16 sps:$4 sm:$0xff]  }
  0x38   : > { %v1897_v12 = vld [vmem:[%s2289_s23 + $0x64] ss:$16 sps:$4 sm:$0xff]   ;;  %v1901_v14 = vld [vmem:[%s2289_s23 + $0x60] ss:$16 sps:$4 sm:$0xff]   ;;  %vm1251_vm0 = vcmask (!%p1796_p7), 64512   ;;  %vm1267_vm1 = vcmask (!%p1796_p7), 1043456  }
  0x39   : > { %v1899_v13 = vld [vmem:[%s2289_s23 + $0x264] ss:$16 sps:$4 sm:$0xff]   ;;  %v1902_v15 = vld [vmem:[%s2289_s23 + $0x260] ss:$16 sps:$4 sm:$0xff]  }
  0x3a   : > { %v1903_v16 = vld [vmem:[%s2289_s23 + $0x84] ss:$16 sps:$4 sm:$0xff]   ;;  %v1907_v18 = vld [vmem:[%s2289_s23 + $0x80] ss:$16 sps:$4 sm:$0xff]  }
  0x3b   : > { %v1905_v17 = vld [vmem:[%s2289_s23 + $0x284] ss:$16 sps:$4 sm:$0xff]   ;;  %v1908_v19 = vld [vmem:[%s2289_s23 + $0x280] ss:$16 sps:$4 sm:$0xff]  }
  0x3c   : > { %948 = vmatpush1.bf16.xpose.msra.mxu0 %v1889_v6  ;;  %v1909_v20 = vld [vmem:[%s2289_s23 + $0xa4] ss:$16 sps:$4 sm:$0xff]   ;;  %v1913_v22 = vld [vmem:[%s2289_s23 + $0xa0] ss:$16 sps:$4 sm:$0xff]   ;;  %v1986_v6 = vld [vmem:[%s2289_s23 + $0x2c] ss:$16 sps:$4 sm:$0xff]  }
  0x3d   : > { %1034 = vmatpush1.bf16.xpose.msra.mxu1 %v1890_v7  ;;  %949 = vmatprep.subr.bf16.mxu0 %v1891_v8  ;;  %v1911_v21 = vld [vmem:[%s2289_s23 + $0x2a4] ss:$16 sps:$4 sm:$0xff]   ;;  %v1914_v23 = vld [vmem:[%s2289_s23 + $0x2a0] ss:$16 sps:$4 sm:$0xff]   ;;  %v1989_v7 = vld [vmem:[%s2289_s23 + $0x22c] ss:$16 sps:$4 sm:$0xff]  }
  0x3e   : > { %1035 = vmatprep.subr.bf16.mxu1 %v1893_v9  ;;  %v1915_v24 = vld [vmem:[%s2289_s23 + $0xc4] ss:$16 sps:$4 sm:$0xff]   ;;  %v1919_v27 = vld [vmem:[%s2289_s23 + $0xc0] ss:$16 sps:$4 sm:$0xff]   ;;  %v2076_v8 = vld [vmem:[%s2537_s0 + $0xc] ss:$16 sps:$4 sm:$0xff]  }
  0x3f   : > { %v1917_v25 = vld [vmem:[%s2289_s23 + $0x2c4] ss:$16 sps:$4 sm:$0xff]   ;;  %v1920_v28 = vld [vmem:[%s2289_s23 + $0x2c0] ss:$16 sps:$4 sm:$0xff]   ;;  %v1984_v9 = vld [vmem:[%s2289_s23 + $0x28] ss:$16 sps:$4 sm:$0xff]  }
  0x40   : > { %v1977_v26 = vld [vmem:[%s2537_s0 + $0x4] ss:$16 sps:$4 sm:$0xff]   ;;  %v1925_v31 = vld [vmem:[%s2289_s23 + $0xe0] ss:$16 sps:$4 sm:$0xff]  }
  0x41   : > { %977 = vmatprep.mubr.bf16.mxu0 %v1977_v26  ;;  %1063 = vmatprep.mubr.bf16.mxu1 %v1977_v26  ;;  %v1921_v29 = vld [vmem:[%s2289_s23 + $0xe4] ss:$16 sps:$4 sm:$0xff]   ;;  %v1926_v32 = vld [vmem:[%s2289_s23 + $0x2e0] ss:$16 sps:$4 sm:$0xff]   ;;  %v2011_v26 = vld [vmem:[%s2289_s23 + $0x2a8] ss:$16 sps:$4 sm:$0xff]  }
  0x42   : > { %v1923_v30 = vld [vmem:[%s2289_s23 + $0x2e4] ss:$16 sps:$4 sm:$0xff]   ;;  %v1931_v35 = vld [vmem:[%s2289_s23 + $0x100] ss:$16 sps:$4 sm:$0xff]  }
  0x43   : > { %v1927_v33 = vld [vmem:[%s2289_s23 + $0x104] ss:$16 sps:$4 sm:$0xff]   ;;  %v1932_v36 = vld [vmem:[%s2289_s23 + $0x300] ss:$16 sps:$4 sm:$0xff]  }
  0x44   : > { %950 = vmatpush1.bf16.xpose.msra.mxu0 %v1895_v10  ;;  %v1929_v34 = vld [vmem:[%s2289_s23 + $0x304] ss:$16 sps:$4 sm:$0xff]   ;;  %v1937_v39 = vld [vmem:[%s2289_s23 + $0x120] ss:$16 sps:$4 sm:$0xff]   ;;  %v1987_v10 = vld [vmem:[%s2289_s23 + $0x228] ss:$16 sps:$4 sm:$0xff]  }
  0x45   : > { %1036 = vmatpush1.bf16.xpose.msra.mxu1 %v1896_v11  ;;  %951 = vmatprep.subr.bf16.mxu0 %v1897_v12  ;;  %v1933_v37 = vld [vmem:[%s2289_s23 + $0x124] ss:$16 sps:$4 sm:$0xff]   ;;  %v1938_v40 = vld [vmem:[%s2289_s23 + $0x320] ss:$16 sps:$4 sm:$0xff]   ;;  %v1992_v11 = vld [vmem:[%s2289_s23 + $0x4c] ss:$16 sps:$4 sm:$0xff]  }
  0x46   : > { %1037 = vmatprep.subr.bf16.mxu1 %v1899_v13  ;;  %v1935_v38 = vld [vmem:[%s2289_s23 + $0x324] ss:$16 sps:$4 sm:$0xff]   ;;  %v1943_v43 = vld [vmem:[%s2289_s23 + $0x140] ss:$16 sps:$4 sm:$0xff]   ;;  %v1995_v12 = vld [vmem:[%s2289_s23 + $0x24c] ss:$16 sps:$4 sm:$0xff]  }
  0x47   : > { %v1939_v41 = vld [vmem:[%s2289_s23 + $0x144] ss:$16 sps:$4 sm:$0xff]   ;;  %v1944_v44 = vld [vmem:[%s2289_s23 + $0x340] ss:$16 sps:$4 sm:$0xff]   ;;  %v1990_v13 = vld [vmem:[%s2289_s23 + $0x48] ss:$16 sps:$4 sm:$0xff]  }
  0x48   : > { %v1941_v42 = vld [vmem:[%s2289_s23 + $0x344] ss:$16 sps:$4 sm:$0xff]   ;;  %v1949_v47 = vld [vmem:[%s2289_s23 + $0x160] ss:$16 sps:$4 sm:$0xff]  }
  0x49   : > { %v1945_v45 = vld [vmem:[%s2289_s23 + $0x164] ss:$16 sps:$4 sm:$0xff]   ;;  %v1950_v48 = vld [vmem:[%s2289_s23 + $0x360] ss:$16 sps:$4 sm:$0xff]  }
  0x4a   : > { %v1947_v46 = vld [vmem:[%s2289_s23 + $0x364] ss:$16 sps:$4 sm:$0xff]   ;;  %v1955_v51 = vld [vmem:[%s2289_s23 + $0x180] ss:$16 sps:$4 sm:$0xff]  }
  0x4b   : > { %v1951_v49 = vld [vmem:[%s2289_s23 + $0x184] ss:$16 sps:$4 sm:$0xff]   ;;  %v1956_v52 = vld [vmem:[%s2289_s23 + $0x380] ss:$16 sps:$4 sm:$0xff]  }
  0x4c   : > { %952 = vmatpush1.bf16.xpose.msra.mxu0 %v1901_v14  ;;  %v1953_v50 = vld [vmem:[%s2289_s23 + $0x384] ss:$16 sps:$4 sm:$0xff]   ;;  %v1961_v55 = vld [vmem:[%s2289_s23 + $0x1a0] ss:$16 sps:$4 sm:$0xff]   ;;  %v1993_v14 = vld [vmem:[%s2289_s23 + $0x248] ss:$16 sps:$4 sm:$0xff]  }
  0x4d   : > { %1038 = vmatpush1.bf16.xpose.msra.mxu1 %v1902_v15  ;;  %953 = vmatprep.subr.bf16.mxu0 %v1903_v16  ;;  %v1957_v53 = vld [vmem:[%s2289_s23 + $0x1a4] ss:$16 sps:$4 sm:$0xff]   ;;  %v1962_v56 = vld [vmem:[%s2289_s23 + $0x3a0] ss:$16 sps:$4 sm:$0xff]   ;;  %v1998_v15 = vld [vmem:[%s2289_s23 + $0x6c] ss:$16 sps:$4 sm:$0xff]  }
  0x4e   : > { %1039 = vmatprep.subr.bf16.mxu1 %v1905_v17  ;;  %v1959_v54 = vld [vmem:[%s2289_s23 + $0x3a4] ss:$16 sps:$4 sm:$0xff]   ;;  %v1967_v59 = vld [vmem:[%s2289_s23 + $0x1c0] ss:$16 sps:$4 sm:$0xff]   ;;  %v2001_v16 = vld [vmem:[%s2289_s23 + $0x26c] ss:$16 sps:$4 sm:$0xff]  }
  0x4f   : > { %v1963_v57 = vld [vmem:[%s2289_s23 + $0x1c4] ss:$16 sps:$4 sm:$0xff]   ;;  %v1968_v60 = vld [vmem:[%s2289_s23 + $0x3c0] ss:$16 sps:$4 sm:$0xff]   ;;  %v1996_v17 = vld [vmem:[%s2289_s23 + $0x68] ss:$16 sps:$4 sm:$0xff]  }
  0x50   : > { %v1965_v58 = vld [vmem:[%s2289_s23 + $0x3c4] ss:$16 sps:$4 sm:$0xff]   ;;  %v1973_v63 = vld [vmem:[%s2289_s23 + $0x1e0] ss:$16 sps:$4 sm:$0xff]  }
  0x51   : > { %v1969_v61 = vld [vmem:[%s2289_s23 + $0x1e4] ss:$16 sps:$4 sm:$0xff]   ;;  %v1974_v0 = vld [vmem:[%s2289_s23 + $0x3e0] ss:$16 sps:$4 sm:$0xff]  }
  0x52   : > { %v1971_v62 = vld [vmem:[%s2289_s23 + $0x3e4] ss:$16 sps:$4 sm:$0xff]   ;;  %v1975_v3 = vld [vmem:[%s2537_s0] ss:$16 sps:$4 sm:$0xff]  }
  0x54   : > { %954 = vmatpush1.bf16.xpose.msra.mxu0 %v1907_v18  ;;  %v1999_v18 = vld [vmem:[%s2289_s23 + $0x268] ss:$16 sps:$4 sm:$0xff]  }
  0x55   : > { %1040 = vmatpush1.bf16.xpose.msra.mxu1 %v1908_v19  ;;  %955 = vmatprep.subr.bf16.mxu0 %v1909_v20  ;;  %v2004_v19 = vld [vmem:[%s2289_s23 + $0x8c] ss:$16 sps:$4 sm:$0xff]  }
  0x56   : > { %1041 = vmatprep.subr.bf16.mxu1 %v1911_v21  ;;  %v2007_v20 = vld [vmem:[%s2289_s23 + $0x28c] ss:$16 sps:$4 sm:$0xff]   ;;  %v2002_v21 = vld [vmem:[%s2289_s23 + $0x88] ss:$16 sps:$4 sm:$0xff]  }
  0x5c   : > { %956 = vmatpush1.bf16.xpose.msra.mxu0 %v1913_v22  ;;  %v2005_v22 = vld [vmem:[%s2289_s23 + $0x288] ss:$16 sps:$4 sm:$0xff]  }
  0x5d   : > { %1042 = vmatpush1.bf16.xpose.msra.mxu1 %v1914_v23  ;;  %957 = vmatprep.subr.bf16.mxu0 %v1915_v24  ;;  %v2010_v23 = vld [vmem:[%s2289_s23 + $0xac] ss:$16 sps:$4 sm:$0xff]  }
  0x5e   : > { %1043 = vmatprep.subr.bf16.mxu1 %v1917_v25  ;;  %v2013_v24 = vld [vmem:[%s2289_s23 + $0x2ac] ss:$16 sps:$4 sm:$0xff]   ;;  %v2008_v25 = vld [vmem:[%s2289_s23 + $0xa8] ss:$16 sps:$4 sm:$0xff]  }
  0x64   : > { %958 = vmatpush1.bf16.xpose.msra.mxu0 %v1919_v27  ;;  %v2016_v27 = vld [vmem:[%s2289_s23 + $0xcc] ss:$16 sps:$4 sm:$0xff]  }
  0x65   : > { %1044 = vmatpush1.bf16.xpose.msra.mxu1 %v1920_v28  ;;  %959 = vmatprep.subr.bf16.mxu0 %v1921_v29  ;;  %v2019_v28 = vld [vmem:[%s2289_s23 + $0x2cc] ss:$16 sps:$4 sm:$0xff]   ;;  %v2014_v29 = vld [vmem:[%s2289_s23 + $0xc8] ss:$16 sps:$4 sm:$0xff]  }
  0x66   : > { %1045 = vmatprep.subr.bf16.mxu1 %v1923_v30  ;;  %v2017_v30 = vld [vmem:[%s2289_s23 + $0x2c8] ss:$16 sps:$4 sm:$0xff]  }
  0x6c   : > { %960 = vmatpush1.bf16.xpose.msra.mxu0 %v1925_v31  ;;  %v2022_v31 = vld [vmem:[%s2289_s23 + $0xec] ss:$16 sps:$4 sm:$0xff]  }
  0x6d   : > { %1046 = vmatpush1.bf16.xpose.msra.mxu1 %v1926_v32  ;;  %961 = vmatprep.subr.bf16.mxu0 %v1927_v33  ;;  %v2025_v32 = vld [vmem:[%s2289_s23 + $0x2ec] ss:$16 sps:$4 sm:$0xff]   ;;  %v2020_v33 = vld [vmem:[%s2289_s23 + $0xe8] ss:$16 sps:$4 sm:$0xff]  }
  0x6e   : > { %1047 = vmatprep.subr.bf16.mxu1 %v1929_v34  ;;  %v2023_v34 = vld [vmem:[%s2289_s23 + $0x2e8] ss:$16 sps:$4 sm:$0xff]  }
  0x74   : > { %962 = vmatpush1.bf16.xpose.msra.mxu0 %v1931_v35  ;;  %v2028_v35 = vld [vmem:[%s2289_s23 + $0x10c] ss:$16 sps:$4 sm:$0xff]  }
  0x75   : > { %1048 = vmatpush1.bf16.xpose.msra.mxu1 %v1932_v36  ;;  %963 = vmatprep.subr.bf16.mxu0 %v1933_v37  ;;  %v2031_v36 = vld [vmem:[%s2289_s23 + $0x30c] ss:$16 sps:$4 sm:$0xff]   ;;  %v2026_v37 = vld [vmem:[%s2289_s23 + $0x108] ss:$16 sps:$4 sm:$0xff]  }
  0x76   : > { %1049 = vmatprep.subr.bf16.mxu1 %v1935_v38  ;;  %v2029_v38 = vld [vmem:[%s2289_s23 + $0x308] ss:$16 sps:$4 sm:$0xff]  }
  0x7c   : > { %964 = vmatpush1.bf16.xpose.msra.mxu0 %v1937_v39  ;;  %v2034_v39 = vld [vmem:[%s2289_s23 + $0x12c] ss:$16 sps:$4 sm:$0xff]  }
  0x7d   : > { %1050 = vmatpush1.bf16.xpose.msra.mxu1 %v1938_v40  ;;  %965 = vmatprep.subr.bf16.mxu0 %v1939_v41  ;;  %v2037_v40 = vld [vmem:[%s2289_s23 + $0x32c] ss:$16 sps:$4 sm:$0xff]   ;;  %v2032_v41 = vld [vmem:[%s2289_s23 + $0x128] ss:$16 sps:$4 sm:$0xff]  }
  0x7e   : > { %1051 = vmatprep.subr.bf16.mxu1 %v1941_v42  ;;  %v2035_v42 = vld [vmem:[%s2289_s23 + $0x328] ss:$16 sps:$4 sm:$0xff]  }
  0x84   : > { %966 = vmatpush1.bf16.xpose.msra.mxu0 %v1943_v43  ;;  %v2040_v43 = vld [vmem:[%s2289_s23 + $0x14c] ss:$16 sps:$4 sm:$0xff]  }
  0x85   : > { %1052 = vmatpush1.bf16.xpose.msra.mxu1 %v1944_v44  ;;  %967 = vmatprep.subr.bf16.mxu0 %v1945_v45  ;;  %v2043_v44 = vld [vmem:[%s2289_s23 + $0x34c] ss:$16 sps:$4 sm:$0xff]   ;;  %v2038_v45 = vld [vmem:[%s2289_s23 + $0x148] ss:$16 sps:$4 sm:$0xff]  }
  0x86   : > { %1053 = vmatprep.subr.bf16.mxu1 %v1947_v46  ;;  %v2041_v46 = vld [vmem:[%s2289_s23 + $0x348] ss:$16 sps:$4 sm:$0xff]  }
  0x8c   : > { %968 = vmatpush1.bf16.xpose.msra.mxu0 %v1949_v47  ;;  %v2046_v47 = vld [vmem:[%s2289_s23 + $0x16c] ss:$16 sps:$4 sm:$0xff]  }
  0x8d   : > { %1054 = vmatpush1.bf16.xpose.msra.mxu1 %v1950_v48  ;;  %969 = vmatprep.subr.bf16.mxu0 %v1951_v49  ;;  %v2049_v48 = vld [vmem:[%s2289_s23 + $0x36c] ss:$16 sps:$4 sm:$0xff]   ;;  %v2044_v49 = vld [vmem:[%s2289_s23 + $0x168] ss:$16 sps:$4 sm:$0xff]  }
  0x8e   : > { %1055 = vmatprep.subr.bf16.mxu1 %v1953_v50  ;;  %v2047_v50 = vld [vmem:[%s2289_s23 + $0x368] ss:$16 sps:$4 sm:$0xff]  }
  0x94   : > { %970 = vmatpush1.bf16.xpose.msra.mxu0 %v1955_v51  ;;  %v2052_v51 = vld [vmem:[%s2289_s23 + $0x18c] ss:$16 sps:$4 sm:$0xff]  }
  0x95   : > { %1056 = vmatpush1.bf16.xpose.msra.mxu1 %v1956_v52  ;;  %971 = vmatprep.subr.bf16.mxu0 %v1957_v53  ;;  %v2055_v52 = vld [vmem:[%s2289_s23 + $0x38c] ss:$16 sps:$4 sm:$0xff]   ;;  %v2050_v53 = vld [vmem:[%s2289_s23 + $0x188] ss:$16 sps:$4 sm:$0xff]  }
  0x96   : > { %1057 = vmatprep.subr.bf16.mxu1 %v1959_v54  ;;  %v2053_v54 = vld [vmem:[%s2289_s23 + $0x388] ss:$16 sps:$4 sm:$0xff]  }
  0x9c   : > { %972 = vmatpush1.bf16.xpose.msra.mxu0 %v1961_v55  ;;  %v2058_v55 = vld [vmem:[%s2289_s23 + $0x1ac] ss:$16 sps:$4 sm:$0xff]  }
  0x9d   : > { %1058 = vmatpush1.bf16.xpose.msra.mxu1 %v1962_v56  ;;  %973 = vmatprep.subr.bf16.mxu0 %v1963_v57  ;;  %v2061_v56 = vld [vmem:[%s2289_s23 + $0x3ac] ss:$16 sps:$4 sm:$0xff]   ;;  %v2056_v57 = vld [vmem:[%s2289_s23 + $0x1a8] ss:$16 sps:$4 sm:$0xff]  }
  0x9e   : > { %1059 = vmatprep.subr.bf16.mxu1 %v1965_v58  ;;  %v2059_v58 = vld [vmem:[%s2289_s23 + $0x3a8] ss:$16 sps:$4 sm:$0xff]  }
  0xa4   : > { %974 = vmatpush1.bf16.xpose.msra.mxu0 %v1967_v59  ;;  %v2064_v59 = vld [vmem:[%s2289_s23 + $0x1cc] ss:$16 sps:$4 sm:$0xff]  }
  0xa5   : > { %1060 = vmatpush1.bf16.xpose.msra.mxu1 %v1968_v60  ;;  %975 = vmatprep.subr.bf16.mxu0 %v1969_v61  ;;  %v2067_v60 = vld [vmem:[%s2289_s23 + $0x3cc] ss:$16 sps:$4 sm:$0xff]   ;;  %v2062_v61 = vld [vmem:[%s2289_s23 + $0x1c8] ss:$16 sps:$4 sm:$0xff]  }
  0xa6   : > { %1061 = vmatprep.subr.bf16.mxu1 %v1971_v62  ;;  %v2065_v62 = vld [vmem:[%s2289_s23 + $0x3c8] ss:$16 sps:$4 sm:$0xff]  }
  0xac   : > { %976 = vmatpush1.bf16.xpose.msra.mxu0 %v1973_v63  ;;  %v2070_v63 = vld [vmem:[%s2289_s23 + $0x1ec] ss:$16 sps:$4 sm:$0xff]  }
  0xad   : > { %1062 = vmatpush1.bf16.xpose.msra.mxu1 %v1974_v0  ;;  %988 = vmatprep.subr.bf16.mxu0 %v1980_v1  ;;  %v2073_v0 = vld [vmem:[%s2289_s23 + $0x3ec] ss:$16 sps:$4 sm:$0xff]   ;;  %v2068_v1 = vld [vmem:[%s2289_s23 + $0x1e8] ss:$16 sps:$4 sm:$0xff]  }
  0xae   : > { %1074 = vmatprep.subr.bf16.mxu1 %v1983_v2  ;;  %v2071_v2 = vld [vmem:[%s2289_s23 + $0x3e8] ss:$16 sps:$4 sm:$0xff]  }
  0xb3   : > { %978 = vmatmul.mubr.bf16.vlgmr.msra.gmra.mrb[0].mxu0 %v1975_v3 }
  0xb4   : > { %1064 = vmatmul.mubr.bf16.vlgmr.msra.gmra.mrb[0].mxu1 %v1975_v3  ;;  %989 = vmatpush1.bf16.xpose.msra.mxu0 %v1978_v4  ;;  %v2074_v3 = vld [vmem:[%s2537_s0 + $0x8] ss:$16 sps:$4 sm:$0xff]  }
  0xb5   : > { %1075 = vmatpush1.bf16.xpose.msra.mxu1 %v1981_v5  ;;  %990 = vmatprep.subr.bf16.mxu0 %v1986_v6 }
  0xb6   : > { %1076 = vmatprep.subr.bf16.mxu1 %v1989_v7  ;;  %1020 = vmatprep.mubr.bf16.mxu0 %v2076_v8 }
  0xb7   : > { %1106 = vmatprep.mubr.bf16.mxu1 %v2076_v8 }
  0xbc   : > { %991 = vmatpush1.bf16.xpose.msra.mxu0 %v1984_v9 }
  0xbd   : > { %1077 = vmatpush1.bf16.xpose.msra.mxu1 %v1987_v10  ;;  %992 = vmatprep.subr.bf16.mxu0 %v1992_v11 }
  0xbe   : > { %1078 = vmatprep.subr.bf16.mxu1 %v1995_v12 }
  0xc4   : > { %993 = vmatpush1.bf16.xpose.msra.mxu0 %v1990_v13 }
  0xc5   : > { %1079 = vmatpush1.bf16.xpose.msra.mxu1 %v1993_v14  ;;  %994 = vmatprep.subr.bf16.mxu0 %v1998_v15 }
  0xc6   : > { %1080 = vmatprep.subr.bf16.mxu1 %v2001_v16 }
  0xcc   : > { %995 = vmatpush1.bf16.xpose.msra.mxu0 %v1996_v17 }
  0xcd   : > { %1081 = vmatpush1.bf16.xpose.msra.mxu1 %v1999_v18  ;;  %996 = vmatprep.subr.bf16.mxu0 %v2004_v19 }
  0xce   : > { %1082 = vmatprep.subr.bf16.mxu1 %v2007_v20 }
  0xd4   : > { %997 = vmatpush1.bf16.xpose.msra.mxu0 %v2002_v21 }
  0xd5   : > { %1083 = vmatpush1.bf16.xpose.msra.mxu1 %v2005_v22  ;;  %998 = vmatprep.subr.bf16.mxu0 %v2010_v23 }
  0xd6   : > { %1084 = vmatprep.subr.bf16.mxu1 %v2013_v24 }
  0xdc   : > { %999 = vmatpush1.bf16.xpose.msra.mxu0 %v2008_v25 }
  0xdd   : > { %1085 = vmatpush1.bf16.xpose.msra.mxu1 %v2011_v26  ;;  %1000 = vmatprep.subr.bf16.mxu0 %v2016_v27 }
  0xde   : > { %1086 = vmatprep.subr.bf16.mxu1 %v2019_v28 }
  0xe4   : > { %1001 = vmatpush1.bf16.xpose.msra.mxu0 %v2014_v29 }
  0xe5   : > { %1087 = vmatpush1.bf16.xpose.msra.mxu1 %v2017_v30  ;;  %1002 = vmatprep.subr.bf16.mxu0 %v2022_v31 }
  0xe6   : > { %1088 = vmatprep.subr.bf16.mxu1 %v2025_v32 }
  0xec   : > { %1003 = vmatpush1.bf16.xpose.msra.mxu0 %v2020_v33 }
  0xed   : > { %1089 = vmatpush1.bf16.xpose.msra.mxu1 %v2023_v34  ;;  %1004 = vmatprep.subr.bf16.mxu0 %v2028_v35 }
  0xee   : > { %1090 = vmatprep.subr.bf16.mxu1 %v2031_v36 }
  0xf4   : > { %1005 = vmatpush1.bf16.xpose.msra.mxu0 %v2026_v37 }
  0xf5   : > { %1091 = vmatpush1.bf16.xpose.msra.mxu1 %v2029_v38  ;;  %1006 = vmatprep.subr.bf16.mxu0 %v2034_v39 }
  0xf6   : > { %1092 = vmatprep.subr.bf16.mxu1 %v2037_v40 }
  0xfc   : > { %1007 = vmatpush1.bf16.xpose.msra.mxu0 %v2032_v41 }
  0xfd   : > { %1093 = vmatpush1.bf16.xpose.msra.mxu1 %v2035_v42  ;;  %1008 = vmatprep.subr.bf16.mxu0 %v2040_v43 }
  0xfe   : > { %1094 = vmatprep.subr.bf16.mxu1 %v2043_v44 }
 0x104   : > { %1009 = vmatpush1.bf16.xpose.msra.mxu0 %v2038_v45 }
 0x105   : > { %1095 = vmatpush1.bf16.xpose.msra.mxu1 %v2041_v46  ;;  %1010 = vmatprep.subr.bf16.mxu0 %v2046_v47 }
 0x106   : > { %1096 = vmatprep.subr.bf16.mxu1 %v2049_v48 }
 0x10c   : > { %1011 = vmatpush1.bf16.xpose.msra.mxu0 %v2044_v49 }
 0x10d   : > { %1097 = vmatpush1.bf16.xpose.msra.mxu1 %v2047_v50  ;;  %1012 = vmatprep.subr.bf16.mxu0 %v2052_v51 }
 0x10e   : > { %1098 = vmatprep.subr.bf16.mxu1 %v2055_v52  ;;  %v2184_v52 = vmov (!%p1796_p7), 0  }
 0x114   : > { %1013 = vmatpush1.bf16.xpose.msra.mxu0 %v2050_v53 }
 0x115   : > { %1099 = vmatpush1.bf16.xpose.msra.mxu1 %v2053_v54  ;;  %1014 = vmatprep.subr.bf16.mxu0 %v2058_v55 }
 0x116   : > { %1100 = vmatprep.subr.bf16.mxu1 %v2061_v56 }
 0x11c   : > { %1015 = vmatpush1.bf16.xpose.msra.mxu0 %v2056_v57 }
 0x11d   : > { %1101 = vmatpush1.bf16.xpose.msra.mxu1 %v2059_v58  ;;  %1016 = vmatprep.subr.bf16.mxu0 %v2064_v59 }
 0x11e   : > { %1102 = vmatprep.subr.bf16.mxu1 %v2067_v60 }
 0x124   : > { %1017 = vmatpush1.bf16.xpose.msra.mxu0 %v2062_v61 }
 0x125   : > { %1103 = vmatpush1.bf16.xpose.msra.mxu1 %v2065_v62  ;;  %1018 = vmatprep.subr.bf16.mxu0 %v2070_v63 }
 0x126   : > { %1104 = vmatprep.subr.bf16.mxu1 %v2073_v0 }
 0x12c   : > { %1019 = vmatpush1.bf16.xpose.msra.mxu0 %v2068_v1 }
 0x12d   : > { %1105 = vmatpush1.bf16.xpose.msra.mxu1 %v2071_v2 }
 0x133   : > { %1021 = vmatmul.mubr.bf16.vlgmr.msra.gmra.mrb[0].mxu0 %v2074_v3 }
 0x134   : > { %1107 = vmatmul.mubr.bf16.vlgmr.msra.gmra.mrb[0].mxu1 %v2074_v3 }
 0x135   : > { %1312 = vmatprep.mubr.bf16.mxu1 (!%p1796_p7), %v2184_v52 }
 0x205   : > { %1131 = sbr.rel (%p1796_p7) target bundleno = 1866 (0x74a), region = 36 }
 0x206   : > { %v1022_v4 = vpop.f32.mrb[0].mxu0 }
 0x207   : > { %v1108_v5 = vpop.f32.mrb[0].mxu1  ;;  %1120 = vst [vmem:[%s1119_s3] sm:$0xff] %v1022_v4  ;;  %v1024_v6 = vpop.f32.mrb[1].mxu0 }
 0x208   : > { %1122 = vst [vmem:[%s1119_s3 + $0x10] sm:$0xff] %v1108_v5  ;;  %v1110_v7 = vpop.f32.mrb[1].mxu1  ;;  %1121 = vst [vmem:[%s1119_s3 + $0x8] sm:$0xff] %v1024_v6  ;;  %v1026_v8 = vpop.f32.mrb[2].mxu0 }
 0x209   : > { %1123 = vst [vmem:[%s1119_s3 + $0x18] sm:$0xff] %v1110_v7  ;;  %v1112_v9 = vpop.f32.mrb[2].mxu1  ;;  %1124 = vst [vmem:[%s1119_s3 + $0x20] sm:$0xff] %v1026_v8  ;;  %v1028_v10 = vpop.f32.mrb[3].mxu0 }
 0x20a   : > { %1126 = vst [vmem:[%s1119_s3 + $0x30] sm:$0xff] %v1112_v9  ;;  %v1114_v11 = vpop.f32.mrb[3].mxu1  ;;  %1125 = vst [vmem:[%s1119_s3 + $0x28] sm:$0xff] %v1028_v10 }
 0x20b   : > { %1127 = vst [vmem:[%s1119_s3 + $0x38] sm:$0xff] %v1114_v11 }
 0x212   : > { %v1146_v12 = vld [vmem:[#allocation2 + $0x48] sm:$0xff]  ;;  %v1145_v14 = vld [vmem:[#allocation2 + $0x40] sm:$0xff]  ;;  %v1148_v21 = vld [vmem:[#allocation2 + $0x58] sm:$0xff] }
 0x213   : > { %v1150_v13 = vld [vmem:[#allocation2 + $0x68] sm:$0xff]  ;;  %v1149_v16 = vld [vmem:[#allocation2 + $0x60] sm:$0xff]  ;;  %v1152_v22 = vld [vmem:[#allocation2 + $0x78] sm:$0xff] }
 0x214   : > { %v2437_v15 = vpack.c.bf16 %v1150_v13, %v1146_v12  ;;  %v1133_v17 = vld [vmem:[#allocation2 + $0x8] sm:$0xff]  ;;  %v2439_v19 = vpack.c.bf16 %v1149_v16, %v1145_v14  ;;  %v1132_v23 = vld [vmem:[#allocation2] sm:$0xff]  ;;  %v2446_v25 = vpack.c.bf16 %v1152_v22, %v1148_v21  ;;  %v1147_v26 = vld [vmem:[#allocation2 + $0x50] sm:$0xff] }
 0x215   : > { %v1137_v18 = vld [vmem:[#allocation2 + $0x28] sm:$0xff]  ;;  %v1136_v24 = vld [vmem:[#allocation2 + $0x20] sm:$0xff]  ;;  %v1151_v27 = vld [vmem:[#allocation2 + $0x70] sm:$0xff] }
 0x216   : > { %v2441_v20 = vpack.c.bf16 %v1137_v18, %v1133_v17  ;;  %1170 = vmatprep.subr.bf16.mxu0 %v2437_v15  ;;  %v1135_v28 = vld [vmem:[#allocation2 + $0x18] sm:$0xff]  ;;  %v2449_v30 = vpack.c.bf16 %v1136_v24, %v1132_v23  ;;  %v2451_v31 = vpack.c.bf16 %v1151_v27, %v1147_v26  ;;  %v1134_v33 = vld [vmem:[#allocation2 + $0x10] sm:$0xff]  ;;  %v1159_v47 = vld [vmem:[#allocation2 + $0x88] sm:$0xff]  ;;  %v1383_v1 = vrot.slane %v2437_v15, 4 }
 0x217   : > { %1171 = vmatpush1.bf16.xpose.msra.mxu0 %v2439_v19  ;;  %v1139_v29 = vld [vmem:[#allocation2 + $0x38] sm:$0xff]  ;;  %v1138_v34 = vld [vmem:[#allocation2 + $0x30] sm:$0xff]  ;;  %v1163_v48 = vld [vmem:[#allocation2 + $0xa8] sm:$0xff]  ;;  %v1382_v5 = vrot.slane %v2439_v19, 4  ;;  %v1385_v6 = vrot.slane %v2446_v25, 4 }
 0x218   : > { %1202 = vmatprep.mubr.bf16.mxu0 %v2441_v20  ;;  %1210 = vmatprep.subr.bf16.mxu0 %v2446_v25  ;;  %v2453_v32 = vpack.c.bf16 %v1139_v29, %v1135_v28  ;;  %v2458_v35 = vpack.c.bf16 %v1138_v34, %v1134_v33  ;;  %v1158_v49 = vld [vmem:[#allocation2 + $0x80] sm:$0xff]  ;;  %v1167_v50 = vpack.c.bf16 %v1163_v48, %v1159_v47  ;;  %v1161_v53 = vld [vmem:[#allocation2 + $0x98] sm:$0xff]  ;;  %v1160_v60 = vld [vmem:[#allocation2 + $0x90] sm:$0xff]  ;;  %v1371_v4 = vrot.slane %v2441_v20, 4 }
 0x219   : > { %v1162_v51 = vld [vmem:[#allocation2 + $0xa0] sm:$0xff]  ;;  %v1165_v54 = vld [vmem:[#allocation2 + $0xb8] sm:$0xff]  ;;  %v1164_v61 = vld [vmem:[#allocation2 + $0xb0] sm:$0xff]  ;;  %v1370_v7 = vrot.slane %v2449_v30, 4  ;;  %v1384_v8 = vrot.slane %v2451_v31, 4 }
 0x21a   : > { %v2465_v55 = vpack.c.bf16 %v1162_v51, %v1158_v49  ;;  %v2467_v56 = vpack.c.bf16 %v1165_v54, %v1161_v53  ;;  %1797 = vmatprep.subr.msk.bf16.mxu1 %vm1267_vm1, %v1167_v50  ;;  %v1488_v57 = vrot.slane %v1167_v50, 4  ;;  %v2475_v62 = vpack.c.bf16 %v1164_v61, %v1160_v60 }
 0x21b   : > { %v1373_v9 = vrot.slane %v2453_v32, 4  ;;  %v1372_v10 = vrot.slane %v2458_v35, 4 }
 0x21c   : > { %v1269_v58 = vsel %vm1267_vm1, %v2465_v55, 0  ;;  %v1275_v3 = vsel %vm1267_vm1, %v2475_v62, 0  ;;  %v1489_v34 = vrot.slane %v2475_v62, 4 }
 0x21d   : > { %1281 = vmatpush1.bf16.msra.mxu1 %v1269_v58 }
 0x21e   : > { %1203 = vmatmul.mubr.bf16.vlgmr.msra.gmra.mrb[0].mxu0 %v2449_v30  ;;  %1799 = vmatprep.subr.msk.bf16.mxu1 %vm1267_vm1, %v2467_v56  ;;  %v1487_v30 = vrot.slane %v2465_v55, 4 }
 0x21f   : > { %1211 = vmatpush1.bf16.xpose.msra.mxu0 %v2451_v31  ;;  %1242 = vmatprep.mubr.bf16.mxu0 %v2453_v32  ;;  %v1490_v32 = vrot.slane %v2467_v56, 4 }
 0x220   : > { %1801 = vmatprep.subr.msk.bf16.mxu0 %vm1267_vm1, %v1488_v57  ;;  %v1495_v31 = vsel %vm1267_vm1, %v1487_v30, 0 }
 0x22a   : > { %1243 = vmatmul.mubr.bf16.vlgmr.msra.gmra.mrb[0].mxu0 %v2458_v35 }
 0x22b   : > { %1538 = vmatprep.mubr.bf16.mxu0 %v2184_v52  ;;  %1507 = vmatpush1.bf16.msra.mxu0 %v1495_v31 }
 0x22c   : > { %1803 = vmatprep.subr.msk.bf16.mxu0 %vm1267_vm1, %v1490_v32 }
 0x2fd   : > { %v1244_v36 = vpop.f32.mrb[0].mxu0 }
 0x2fe   : > { %v1250_v37 = vmul.f32 5.0, %v1244_v36  ;;  %v1246_v38 = vpop.f32.mrb[1].mxu0 }
 0x2ff   : > { %v1247_v39 = vpop.f32.mrb[2].mxu0  ;;  %v1501_v38 = vsel %vm1267_vm1, %v1489_v34, 0 }
 0x300   : > { %v1248_v40 = vpop.f32.mrb[3].mxu0  ;;  %v1252_v41 = vsel %vm1251_vm0, %v1250_v37, -inf }
 0x301   : > { %1253 = vmax.xlane.f32.xlu0 %v1252_v41 }
 0x38e   : > { %v1254_v42 = vpop.xlane.xlu0 %1253 }
 0x38f   : > { %v1255_v43 = vsub.f32 %v1250_v37, %v1254_v42 }
 0x391   : > { %v1256_v44 = vmul.f32 1.442695, %v1255_v43 }
 0x393   : > { %2077 = vpow2.f32 %v1256_v44 }
 0x39d   : > { %v2078_v45 = vpop.eup %2077 }
 0x39e   : > { %v1258_v46 = vsel %vm1251_vm0, %v2078_v45, 0.0 }
 0x39f   : > { %1259 = vadd.xlane.f32.xlu0 %v1258_v46 }
 0x42c   : > { %v1260_v59 = vpop.xlane.xlu0 %1259 }
 0x42d   : > { %2079 = vrcp.f32 %v1260_v59 }
 0x437   : > { %v2080_v63 = vpop.eup %2079 }
 0x438   : > { %v1262_v0 = vmul.f32 %v2080_v63, %v2078_v45 }
 0x43a   : > { %v1263_v2 = vpack.c.bf16 %v1262_v0, %v1262_v0 }
 0x43c   : > { %1798 = vmatmul.mubr.msk.bf16.vlgmr.msra.gmra.mrb[0].mxu1 %vm1251_vm0, %v1263_v2 }
 0x43d   : > { %1322 = vmatpush1.bf16.msra.mxu1 %v1275_v3  ;;  %1353 = vmatprep.mubr.bf16.mxu1 %v2184_v52 }
 0x43e   : > { %1390 = vmatprep.subr.bf16.mxu1 %v1383_v1 }
 0x444   : > { %1800 = vmatmul.mubr.msk.bf16.vlgmr.msra.gmra.mrb[4].mxu1 %vm1251_vm0, %v1263_v2 }
 0x445   : > { %1422 = vmatprep.mubr.bf16.mxu1 %v1371_v4 }
 0x446   : > { %1391 = vmatpush1.bf16.xpose.msra.mxu1 %v1382_v5 }
 0x447   : > { %1430 = vmatprep.subr.bf16.mxu1 %v1385_v6 }
 0x44d   : > { %1423 = vmatmul.mubr.bf16.vlgmr.msra.gmra.mrb[8].mxu1 %v1370_v7 }
 0x44e   : > { %1431 = vmatpush1.bf16.xpose.msra.mxu1 %v1384_v8  ;;  %1462 = vmatprep.mubr.bf16.mxu1 %v1373_v9 }
 0x459   : > { %1463 = vmatmul.mubr.bf16.vlgmr.msra.gmra.mrb[8].mxu1 %v1372_v10 }
 0x50f   : > { %v1314_v11 = vpop.f32.mrb[0].mxu1 }
 0x510   : > { %1362 = vst [vmem:[#allocation6] sm:$0xff] %v1314_v11  ;;  %v1316_v12 = vpop.f32.mrb[1].mxu1 }
 0x511   : > { %1363 = vst [vmem:[#allocation6 + $0x8] sm:$0xff] %v1316_v12  ;;  %v1318_v13 = vpop.f32.mrb[2].mxu1 }
 0x512   : > { %v1319_v14 = vpop.f32.mrb[3].mxu1 }
 0x517   : > { %v1355_v15 = vpop.f32.mrb[4].mxu1 }
 0x518   : > { %1364 = vst [vmem:[#allocation6 + $0x10] sm:$0xff] %v1355_v15  ;;  %v1357_v16 = vpop.f32.mrb[5].mxu1 }
 0x519   : > { %1365 = vst [vmem:[#allocation6 + $0x18] sm:$0xff] %v1357_v16  ;;  %v1359_v17 = vpop.f32.mrb[6].mxu1 }
 0x51a   : > { %v1360_v18 = vpop.f32.mrb[7].mxu1 }
 0x52c   : > { %v1464_v19 = vpop.f32.mrb[8].mxu1 }
 0x52d   : > { %v1470_v20 = vmul.f32 5.0, %v1464_v19  ;;  %v1466_v21 = vpop.f32.mrb[9].mxu1 }
 0x52e   : > { %v1467_v22 = vpop.f32.mrb[10].mxu1 }
 0x52f   : > { %v1468_v23 = vpop.f32.mrb[11].mxu1  ;;  %v1471_v24 = vsel %vm1251_vm0, %v1470_v20, -inf }
 0x530   : > { %1472 = vmax.xlane.f32.xlu1 %v1471_v24 }
 0x5bd   : > { %v1473_v25 = vpop.xlane.xlu1 %1472 }
 0x5be   : > { %v1474_v26 = vsub.f32 %v1470_v20, %v1473_v25 }
 0x5c0   : > { %v1475_v27 = vmul.f32 1.442695, %v1474_v26 }
 0x5c2   : > { %2081 = vpow2.f32 %v1475_v27 }
 0x5cc   : > { %v2082_v28 = vpop.eup %2081 }
 0x5cd   : > { %v1477_v29 = vsel %vm1251_vm0, %v2082_v28, 0.0 }
 0x5ce   : > { %1478 = vadd.xlane.f32.xlu1 %v1477_v29 }
 0x65b   : > { %v1479_v33 = vpop.xlane.xlu1 %1478 }
 0x65c   : > { %2083 = vrcp.f32 %v1479_v33 }
 0x666   : > { %v2084_v35 = vpop.eup %2083 }
 0x667   : > { %v1481_v36 = vmul.f32 %v2084_v35, %v2082_v28 }
 0x669   : > { %v1482_v37 = vpack.c.bf16 %v1481_v36, %v1481_v36 }
 0x66b   : > { %1802 = vmatmul.mubr.msk.bf16.vlgmr.msra.gmra.mrb[4].mxu0 %vm1251_vm0, %v1482_v37 }
 0x66c   : > { %1548 = vmatpush1.bf16.msra.mxu0 %v1501_v38  ;;  %1579 = vmatprep.mubr.bf16.mxu0 %v2184_v52 }
 0x673   : > { %1804 = vmatmul.mubr.msk.bf16.vlgmr.msra.gmra.mrb[8].mxu0 %vm1251_vm0, %v1482_v37 }
 0x73e   : > { %v1540_v39 = vpop.f32.mrb[4].mxu0 }
 0x73f   : > { %1588 = vst [vmem:[#allocation6 + $0x20] sm:$0xff] %v1540_v39  ;;  %v1542_v40 = vpop.f32.mrb[5].mxu0 }
 0x740   : > { %1589 = vst [vmem:[#allocation6 + $0x28] sm:$0xff] %v1542_v40  ;;  %v1544_v41 = vpop.f32.mrb[6].mxu0 }
 0x741   : > { %v1545_v42 = vpop.f32.mrb[7].mxu0 }
 0x746   : > { %v1581_v43 = vpop.f32.mrb[8].mxu0 }
 0x747   : > { %1590 = vst [vmem:[#allocation6 + $0x30] sm:$0xff] %v1581_v43  ;;  %v1583_v44 = vpop.f32.mrb[9].mxu0 }
 0x748   : > { %1591 = vst [vmem:[#allocation6 + $0x38] sm:$0xff] %v1583_v44  ;;  %v1585_v45 = vpop.f32.mrb[10].mxu0 }
 0x749   : > { %v1586_v46 = vpop.f32.mrb[11].mxu0 }
 0x74a PF: > { %p1839_p8 = scmp.eq.s32.totalorder %s2222_s13, 2  ;;  %s2185_s4 = smov [#allocation6]  }
 0x74b   : > { %s1598_s5 = sshll.u32 %s2185_s4, 4  ;;  %s1599_s5 = int_to_ptr.vmem [resolvable:$true] %s1598_s5 }
 0x74c   : > { %s2115_s6 = scalar_lea.vmem %s1599_s5, 1024  ;;  %p2122_p6 = scmp.lt.s32.totalorder %s1599_s5, %s1599_s5 }
 0x74d   : > { %p2116_p9 = scmp.ne.s32.totalorder %s1599_s5, %s2115_s6  ;;  %p2123_p10 = scmp.lt.s32.totalorder %s2115_s6, %s2115_s6 }
 0x74f   : > { %p2117_p4 = pnand %p2116_p9, %p1839_p8  ;;  %p2124_p12 = por %p2123_p10, %p2122_p6 }
 0x751   : > { %p2118_p5 = pneg %p2117_p4 }
 0x753   : > { %p2125_p0 = pnand %p2124_p12, %p2118_p5 }
 0x755   : > { %2128 = shalt.err (!%p2125_p0)
}
 0x756   : > { %s2129_s9 = scalar_lea.hbm %s2539_s2, 1024 }
 0x757   : > { %p2130_p1 = scmp.ne.s32.totalorder %s2539_s2, %s2129_s9  ;;  %p2135_p13 = scmp.lt.u32.totalorder %s2129_s9, %s2539_s2 }
 0x759   : > { %p2131_p2 = pnand %p2130_p1, %p1839_p8 }
 0x75b   : > { %p2132_p11 = pneg %p2131_p2 }
 0x75d   : > { %p2137_p3 = pnand %p2135_p13, %p2132_p11 }
 0x75f   : > { %2140 = shalt.err (!%p2137_p3)
}
 0x760   : > { %s2186_s21 = smov 512   ;;  %s2187_s22 = smov 32  }
 0x761   : > { %1831 = dma.vmem_to_hbm [thread:$0]  (%p1839_p8), %s1599_s5, 1024, %s2539_s2, [#allocation5], %s2186_s21, %s2186_s21, %s2187_s22  }
 0x762   : > { %2162 = dma.done.wait (%p1839_p8), [#allocation5], 1024  }
 0x763   : > { %2164 = vsyncadd (%p1839_p8), [#allocation5], 4294966272 }
 0x764 PF: > { %p13_p7 = scmp.ge.s32.totalorder %s2225_s14, 5   ;;  %s2543_s9 = smov %s2171_s10 }
 0x765   : > { %s2544_s10 = smov %s2175_s11  ;;  %s2545_s11 = smov %s2235_s17 }
 0x766   : > { %s2546_s12 = smov %s2225_s14  ;;  %15 = sbr.rel (!%p13_p7) target bundleno = 4 (0x4), region = 72 }
 0x76d   :  { %1614 = vsyncpa [#allocation4], 1 }
 0x76e   :  { %1616 = vsyncpa [#allocation4 + $0x1], 1 }
 0x76f   :  { %1617 = vsyncpa [#allocation5], 1 }
 0x770   :  { %1619 = vsyncpa [#allocation5 + $0x1], 1 }

</bundles_post_ra>
